<compile_context>
chip_gen: v7x
topology: tpu7x:2x2x1
jax: 0.10.0
libtpu: 0.0.40
codegen_flags: <defaults>
</compile_context>

<pallas_src>
import math

import jax
import jax.numpy as jnp
from jax.experimental import pallas as pl
from jax.experimental.pallas import tpu as pltpu

DEFAULT_THRESHOLD = 0.005
LANE = 128


# ----------------------------------------------------------------------------
# Part 1: View  (the spec module)
# ----------------------------------------------------------------------------
def _view_copy_kernel(x_ref, o_ref):
    # Identity copy of one lane-dense (tm, 128) tile.
    o_ref[...] = x_ref[...]


def _resolve_view_shape(total, shape):
    """Resolve a torch.view-style shape (at most one -1 wildcard)."""
    shape = list(shape)
    if shape.count(-1) > 1:
        raise ValueError("only one -1 dimension allowed in view()")
    if -1 in shape:
        known = 1
        for s in shape:
            if s != -1:
                known *= s
        if known == 0 or total % known != 0:
            raise ValueError(f"cannot view {total} elements as {tuple(shape)}")
        shape[shape.index(-1)] = total // known
    if math.prod(shape) != total:
        raise ValueError(f"cannot view {total} elements as {tuple(shape)}")
    return tuple(shape)


def pallas_view(x, *shape):
    """Forward of View(*shape): returns x reshaped to `shape` (contiguous copy)."""
    total = x.size
    out_shape = _resolve_view_shape(total, shape)

    # Lay the data out lane-dense: (rows, 128), rows a multiple of the tile.
    rows = (total + LANE - 1) // LANE
    tm = 512 if rows >= 512 else ((rows + 7) // 8) * 8      # big tiles, /8 aligned
    rows_pad = ((rows + tm - 1) // tm) * tm

    flat = x.reshape(-1)
    pad = rows_pad * LANE - total
    if pad:
        flat = jnp.pad(flat, (0, pad))
    x2d = flat.reshape(rows_pad, LANE)

    bytes_accessed = 2 * rows_pad * LANE * x.dtype.itemsize
    out2d = pl.pallas_call(
        _view_copy_kernel,
        out_shape=jax.ShapeDtypeStruct((rows_pad, LANE), x.dtype),
        grid_spec=pltpu.PrefetchScalarGridSpec(
            num_scalar_prefetch=0,
            grid=(rows_pad // tm,),
            in_specs=[pl.BlockSpec((tm, LANE), lambda i: (i, 0))],
            out_specs=pl.BlockSpec((tm, LANE), lambda i: (i, 0)),
        ),
        compiler_params=pltpu.CompilerParams(
            dimension_semantics=("parallel",)),
        cost_estimate=pl.CostEstimate(
            flops=0, transcendentals=0, bytes_accessed=bytes_accessed),
    )(x2d)

    return out2d.reshape(-1)[:total].reshape(out_shape)


# ----------------------------------------------------------------------------
# Part 2: SharableConv2d (previous kernel, updated per the performance review)
# ----------------------------------------------------------------------------
def _conv_mm_kernel(p_ref, w_ref, b_ref, o_ref):
    """(TM, K) x (K, TN) on the MXU, f32 accumulate, bias add, lane-dense store."""
    acc = jnp.dot(p_ref[...], w_ref[...], preferred_element_type=jnp.float32)
    o_ref[...] = (acc + b_ref[...]).astype(o_ref.dtype)


def sharable_conv2d(x, weight, bias=None, piggymask=None,
                    stride=(1, 1), padding=(0, 0), dilation=(1, 1),
                    groups=1, threshold=DEFAULT_THRESHOLD,
                    tm=512, tn=128, use_bf16=False):
    """out = conv2d(x, binarize(piggymask) * weight, bias).

    x: (N, C, H, W) NCHW, weight: (OC, C, KH, KW) OIHW.
    """
    if groups != 1:
        # TODO(synk): grouped convolution not implemented in this kernel.
        raise NotImplementedError("groups > 1 not supported")

    N, C, H, W = x.shape
    OC, _, KH, KW = weight.shape
    sh, sw = stride
    ph, pw = padding
    dh, dw = dilation
    OH = (H + 2 * ph - dh * (KH - 1) - 1) // sh + 1
    OW = (W + 2 * pw - dw * (KW - 1) - 1) // sw + 1

    # Fuse the binarizer into the weight ONCE, in f32, in the wrapper.
    if piggymask is not None:
        weight = (piggymask > threshold).astype(weight.dtype) * weight

    # ---- glue: im2col (plain JAX) -----------------------------------------
    # TODO(synk): fold the KH*KW gather into the kernel to cut HBM traffic.
    xp = jnp.pad(x, ((0, 0), (0, 0), (ph, ph), (pw, pw)))
    cols = []
    for kh in range(KH):
        for kw in range(KW):
            h0, w0 = kh * dh, kw * dw
            cols.append(xp[:, :, h0:h0 + sh * OH:sh, w0:w0 + sw * OW:sw])
    patches = jnp.stack(cols, axis=2)                      # (N, C, KH*KW, OH, OW)
    K = C * KH * KW
    patches = patches.reshape(N, K, OH * OW).transpose(0, 2, 1).reshape(N * OH * OW, K)

    w_mat = weight.reshape(OC, K).T                        # (K, OC)
    b_row = (bias if bias is not None
             else jnp.zeros((OC,), weight.dtype)).reshape(1, OC).astype(jnp.float32)

    # ---- padding / tiling --------------------------------------------------
    M = patches.shape[0]
    tm = min(tm, ((M + 7) // 8) * 8)
    tm = max(8, (tm // 8) * 8)                             # multiple of 8
    M_pad = ((M + tm - 1) // tm) * tm
    OC_pad = ((OC + tn - 1) // tn) * tn                    # lane-dense output
    K_pad = ((K + 7) // 8) * 8                             # sublane aligned

    patches = jnp.pad(patches, ((0, M_pad - M), (0, K_pad - K)))
    w_mat = jnp.pad(w_mat, ((0, K_pad - K), (0, OC_pad - OC)))
    b_row = jnp.pad(b_row, ((0, 0), (0, OC_pad - OC)))

    if use_bf16:
        # Mask already applied in f32; only the MXU operands are downcast.
        patches = patches.astype(jnp.bfloat16)
        w_mat = w_mat.astype(jnp.bfloat16)

    itm = patches.dtype.itemsize
    flops = 2 * M_pad * K_pad * OC_pad
    bytes_accessed = (patches.size * itm + w_mat.size * itm
                      + b_row.size * 4 + M_pad * OC_pad * x.dtype.itemsize)

    # Raise the scoped VMEM limit only when the working set actually needs it.
    per_step_vmem = (2 * tm * K_pad * itm          # double-buffered patch tile
                     + 2 * K_pad * tn * itm        # weight tile
                     + 2 * 1 * tn * 4              # bias row
                     + 2 * tm * tn * x.dtype.itemsize)
    vmem_limit = None
    if per_step_vmem > 32 * 1024 * 1024:
        vmem_limit = min(per_step_vmem + (4 << 20), 96 * 1024 * 1024)

    out_mat = pl.pallas_call(
        _conv_mm_kernel,
        out_shape=jax.ShapeDtypeStruct((M_pad, OC_pad), x.dtype),
        grid_spec=pltpu.PrefetchScalarGridSpec(
            num_scalar_prefetch=0,
            grid=(M_pad // tm, OC_pad // tn),
            in_specs=[
                pl.BlockSpec((tm, K_pad), lambda i, j: (i, 0)),   # patch tile
                pl.BlockSpec((K_pad, tn), lambda i, j: (0, j)),   # fused weight
                pl.BlockSpec((1, tn), lambda i, j: (0, j)),       # bias row
            ],
            out_specs=pl.BlockSpec((tm, tn), lambda i, j: (i, j)),
        ),
        compiler_params=pltpu.CompilerParams(
            dimension_semantics=("parallel", "parallel"),
            vmem_limit_bytes=vmem_limit),
        cost_estimate=pl.CostEstimate(
            flops=flops, transcendentals=0, bytes_accessed=bytes_accessed),
    )(patches, w_mat, b_row)

    out = out_mat[:M, :OC].reshape(N, OH, OW, OC).transpose(0, 3, 1, 2)  # NCHW
    return out.astype(x.dtype)


def _conv_reference(x, weight, bias, piggymask, stride, padding, dilation, threshold):
    if piggymask is not None:
        w_eff = (piggymask > threshold).astype(weight.dtype) * weight
    else:
        w_eff = weight
    out = jax.lax.conv_general_dilated(
        x, w_eff, window_strides=stride,
        padding=[(padding[0], padding[0]), (padding[1], padding[1])],
        rhs_dilation=dilation,
        dimension_numbers=("NCHW", "OIHW", "NCHW"))
    if bias is not None:
        out = out + bias.reshape(1, -1, 1, 1)
    return out


# ----------------------------------------------------------------------------
if __name__ == "__main__":
    key = jax.random.PRNGKey(0)
    kx, kw, kb, km = jax.random.split(key, 4)

    # ---- Part 1: View -------------------------------------------------------
    # Typical use in the CPG repo: View(-1, features) to flatten conv features.
    x = jax.random.normal(kx, (2, 4, 16, 16), dtype=jnp.float32)

    out_flat = jax.block_until_ready(pallas_view(x, -1, 4 * 16 * 16))
    assert out_flat.shape == (2, 1024), out_flat.shape
    assert jnp.array_equal(out_flat, x.reshape(-1, 1024)), "View(-1, 1024) mismatch"

    out_3d = jax.block_until_ready(pallas_view(x, 2, 64, 16))
    assert out_3d.shape == (2, 64, 16), out_3d.shape
    assert jnp.array_equal(out_3d, x.reshape(2, 64, 16)), "View(2, 64, 16) mismatch"

    # ---- Part 2: SharableConv2d (previously reviewed kernel, improved) ------
    OC, KH, KW = 8, 3, 3
    stride, padding, dilation = (1, 1), (1, 1), (1, 1)
    weight = jax.random.normal(kw, (OC, 4, KH, KW), dtype=jnp.float32) * 0.1
    bias = jax.random.normal(kb, (OC,), dtype=jnp.float32) * 0.1
    piggymask = jax.random.uniform(km, (OC, 4, KH, KW), dtype=jnp.float32,
                                   minval=0.0, maxval=0.01)

    conv_out = sharable_conv2d(x, weight, bias, piggymask,
                               stride=stride, padding=padding, dilation=dilation,
                               groups=1, threshold=DEFAULT_THRESHOLD,
                               use_bf16=False)  # set True on v6e/v7x for bf16 MXU
    conv_out = jax.block_until_ready(conv_out)
    conv_ref = _conv_reference(x, weight, bias, piggymask,
                               stride, padding, dilation, DEFAULT_THRESHOLD)
    assert conv_out.shape == conv_ref.shape == (2, OC, 16, 16)
    assert jnp.allclose(conv_out, conv_ref, atol=1e-4, rtol=1e-4), "conv mismatch"

    print("KERNEL_OK")
</pallas_src>

<mosaic_0001>
module attributes {stable_mosaic.version = 11 : i64} {
  func.func @_view_copy_kernel(%arg0: i32, %arg1: memref<16x128xf32, #tpu.memory_space<vmem>>, %arg2: memref<16x128xf32, #tpu.memory_space<vmem>>) attributes {dimension_semantics = [#tpu.dimension_semantics<parallel>], iteration_bounds = array<i64: 1>, scalar_prefetch = 0 : i64, scratch_operands = 0 : i64, tpu.core_type = #tpu.core_type<tc>, window_params = [{transform_indices = @transform_0, window_bounds = array<i64: 16, 128>}, {transform_indices = @transform_1, window_bounds = array<i64: 16, 128>}]} {
    %c0 = arith.constant 0 : index
    %c0_0 = arith.constant 0 : index
    %0 = vector.load %arg1[%c0, %c0_0] : memref<16x128xf32, #tpu.memory_space<vmem>>, vector<16x128xf32>
    %c0_1 = arith.constant 0 : index
    %c0_2 = arith.constant 0 : index
    %1 = vector.load %arg2[%c0_1, %c0_2] : memref<16x128xf32, #tpu.memory_space<vmem>>, vector<16x128xf32>
    tpu.vector_store %arg2[%c0_1, %c0_2], %0 {strides = array<i32>} : memref<16x128xf32, #tpu.memory_space<vmem>>, vector<16x128xf32>,
    return
  }
  func.func @transform_0(%arg0: i32) -> (i32, i32) {
    %c0_i32 = arith.constant 0 : i32
    %c0_i32_0 = arith.constant 0 : i32
    return %arg0, %c0_i32 : i32, i32
  }
  func.func @transform_1(%arg0: i32) -> (i32, i32) {
    %c0_i32 = arith.constant 0 : i32
    %c0_i32_0 = arith.constant 0 : i32
    return %arg0, %c0_i32 : i32, i32
  }
}

</mosaic_0001>

<bundles_post_ra>
// kernel: tpu_custom_call.1
= control target key start
LH: loop header
LB: loop body
LE: loop exit
PB: predicated region body
PF: predicated region fallthrough
CT: control target
= control target key end

     0   :  { %6 = vsyncpa [#allocation3], 0  ;;  %s134_s0 = inlined_call_operand.hbm [shape: f32[16,128], index: 0, kind: input, shape index: {}]   ;;  %s135_s1 = inlined_call_operand.hbm [shape: f32[16,128], index: 1, kind: output, shape index: {}]  }
   0x1   :  { %7 = vsyncpa [#allocation4], 0  ;;  %s96_s6 = smov [#allocation2]   ;;  %s48_s10 = scalar_lea.hbm %s134_s0, 256 }
   0x2   :  { %s13_s7 = sshll.u32 %s96_s6, 4  ;;  %p49_p0 = scmp.ne.s32.totalorder %s134_s0, %s48_s10  ;;  %s14_s7 = int_to_ptr.vmem [resolvable:$true] %s13_s7 }
   0x3   :  { %p52_p1 = scmp.lt.u32.totalorder %s48_s10, %s134_s0 }
   0x5   :  { %p54_p2 = pnand %p52_p1, %p49_p0 }
   0x7   :  { %57 = shalt.err (!%p54_p2)
}
   0x8   :  { %s58_s15 = scalar_lea.vmem %s14_s7, 256  ;;  %p63_p4 = scmp.lt.s32.totalorder %s14_s7, %s14_s7 }
   0x9   :  { %p59_p3 = scmp.ne.s32.totalorder %s14_s7, %s58_s15  ;;  %p64_p5 = scmp.lt.s32.totalorder %s58_s15, %s58_s15 }
   0xb   :  { %p65_p6 = por %p64_p5, %p63_p4 }
   0xd   :  { %p66_p7 = pnand %p65_p6, %p59_p3 }
   0xf   :  { %69 = shalt.err (!%p66_p7)
}
  0x10   :  { %s97_s16 = smov 128   ;;  %s98_s17 = smov 8  }
  0x11   :  { %19 = dma.hbm_to_vmem [thread:$0]  %s134_s0, 256, %s14_s7, [#allocation3], %s97_s16, %s97_s16, %s98_s17  }
  0x12   :  { %92 = dma.done.wait [#allocation3], 256  }
  0x13   :  { %93 = vsyncadd [#allocation3], 4294967040  ;;  %s99_s20 = smov [#allocation5]   ;;  %v23_v0 = vld [vmem:[#allocation2] sm:$0xff]  ;;  %v24_v1 = vld [vmem:[#allocation2 + $0x8] sm:$0xff] }
  0x14   :  { %s32_s21 = sshll.u32 %s99_s20, 4  ;;  %25 = vst [vmem:[#allocation5] sm:$0xff] %v23_v0  ;;  %26 = vst [vmem:[#allocation5 + $0x8] sm:$0xff] %v24_v1  ;;  %s33_s21 = int_to_ptr.vmem [resolvable:$true] %s32_s21 }
  0x15   :  { %s70_s22 = scalar_lea.vmem %s33_s21, 256  ;;  %p75_p9 = scmp.lt.s32.totalorder %s33_s21, %s33_s21 }
  0x16   :  { %p71_p8 = scmp.ne.s32.totalorder %s33_s21, %s70_s22  ;;  %p76_p10 = scmp.lt.s32.totalorder %s70_s22, %s70_s22 }
  0x18   :  { %p77_p11 = por %p76_p10, %p75_p9 }
  0x1a   :  { %p78_p12 = pnand %p77_p11, %p71_p8 }
  0x1c   :  { %81 = shalt.err (!%p78_p12)
}
  0x1d   :  { %s82_s0 = scalar_lea.hbm %s135_s1, 256 }
  0x1e   :  { %p83_p13 = scmp.ne.s32.totalorder %s135_s1, %s82_s0  ;;  %p86_p0 = scmp.lt.u32.totalorder %s82_s0, %s135_s1 }
  0x20   :  { %p88_p1 = pnand %p86_p0, %p83_p13 }
  0x22   :  { %91 = shalt.err (!%p88_p1)
}
  0x23   :  { %38 = dma.vmem_to_hbm [thread:$0]  %s33_s21, 256, %s135_s1, [#allocation4], %s97_s16, %s97_s16, %s98_s17  }
  0x24   :  { %94 = dma.done.wait [#allocation4], 256  }
  0x25   :  { %95 = vsyncadd [#allocation4], 4294967040 }
  0x26   :  { %42 = vsyncpa [#allocation3], 1 }
  0x27   :  { %43 = vsyncpa [#allocation4], 1 }

</bundles_post_ra>
